<compile_context>
chip_gen: v7x
topology: tpu7x:2x2x1
jax: 0.10.0
libtpu: 0.0.40
codegen_flags: <defaults>
</compile_context>

<pallas_src>
import functools
import math

import jax
import jax.numpy as jnp
from jax.experimental import pallas as pl
from jax.experimental.pallas import tpu as pltpu

EPS = 1e-08                   # clamp applied to softmax probs in RCE
LOG_SMOOTH = math.log(1e-4)   # log(clamp(one_hot, 1e-4, 1)) off-target value
LANE = 128
MIN_TILE_N = 512              # don't over-fragment small batches
MAX_TILE_N = 8192             # ~0.5 MiB logits/block (C=10, f32)
TARGET_BLOCKS = 8             # >= 2 for pipelining, 8 feeds both v7x TCs


def _round_up(x, m):
    return ((x + m - 1) // m) * m


def _make_kernel(alpha: float, beta: float, n_total: int, tile_n: int):
    def kernel(pred_ref, lbl_ref, out_ref):
        # pred_ref: (C, TILE_N) logits (native dtype, lane-dense: batch on lanes)
        # lbl_ref:  (1, TILE_N) int32 labels
        # out_ref:  (1, 128) per-block partial sum (lane 0), disjoint per block
        x = pred_ref[...].astype(jnp.float32)
        lbl = lbl_ref[...]
        c = x.shape[0]

        # Valid mask from the GLOBAL column index; ragged-block garbage lanes
        # (logits and labels) are fully masked regardless of their contents.
        col = (pl.program_id(0) * tile_n
               + jax.lax.broadcasted_iota(jnp.int32, (1, tile_n), 1))
        valid = col < n_total

        # x at the target class, without materializing a f32 one-hot (C,T) temp.
        cls = jax.lax.broadcasted_iota(jnp.int32, x.shape, 0)       # class id
        x_tgt = jnp.sum(jnp.where(cls == lbl, x, 0.0), axis=0, keepdims=True)

        # ---- shared softmax pieces (the (C,T) exp is the only big EUP op) ----
        m = jnp.max(x, axis=0, keepdims=True)                       # (1, T)
        ez = jnp.exp(x - m)                                         # (C, T)
        se = jnp.sum(ez, axis=0, keepdims=True)                     # (1, T)
        lse = m + jnp.log(se)                                       # (1, T)

        # ---- NCE = (lse - x_tgt) / (C*lse - sum(x)); no logp materialized ----
        sum_x = jnp.sum(x, axis=0, keepdims=True)
        nce = (lse - x_tgt) / (c * lse - sum_x)                     # (1, T)

        # ---- RCE: log(clamp(one_hot,1e-4,1)) is 0 at the target class and
        # log(1e-4) elsewhere => rce = -log(1e-4) * (sum(clip(p)) - clip(p)_t).
        # softmax <= 1 by construction so only the eps floor is needed; the
        # target prob is recovered on the (1,T) row as exp(x_tgt - lse).
        inv_se = pl.reciprocal(se, approx=False)                    # (1, T)
        sum_p = jnp.sum(jnp.maximum(ez * inv_se, EPS), axis=0, keepdims=True)
        p_tgt = jnp.maximum(jnp.exp(x_tgt - lse), EPS)              # (1, T)
        rce = (-LOG_SMOOTH) * (sum_p - p_tgt)                       # (1, T)

        loss = alpha * nce + beta * rce                             # (1, T)
        block_sum = jnp.sum(jnp.where(valid, loss, 0.0))            # scalar

        lane = jax.lax.broadcasted_iota(jnp.int32, (1, LANE), 1)
        out_ref[...] = jnp.where(lane == 0, block_sum, 0.0)

    return kernel


@functools.partial(
    jax.jit, static_argnames=("num_classes", "alpha", "beta", "class_major"))
def nce_and_rce_loss(pred, labels, *, num_classes=10, alpha=1.0, beta=1.0,
                     class_major=False):
    """NCE+RCE loss.

    pred:   (N, C) logits, or (C, N) if class_major=True (zero-relayout path).
    labels: (N,) int class ids.  Returns a scalar f32.
    """
    if class_major:
        c, n = pred.shape
        pred_cm = pred                       # already lane-dense: no relayout
    else:
        n, c = pred.shape
        pred_cm = pred.T                     # single XLA relayout pass (see TODO above)
    assert c == num_classes

    lbl_row = labels.astype(jnp.int32).reshape(1, n)   # free reshape, no pad

    tile_n = min(MAX_TILE_N,
                 max(MIN_TILE_N, _round_up(pl.cdiv(n, TARGET_BLOCKS), LANE)))
    num_blocks = pl.cdiv(n, tile_n)

    cost = pl.CostEstimate(
        flops=14 * n * c,
        transcendentals=n * c + 3 * n,          # exp(N*C) + log/recip/exp on rows
        bytes_accessed=(n * c * pred.dtype.itemsize + 4 * n
                        + 4 * LANE * num_blocks))

    partials = pl.pallas_call(
        _make_kernel(float(alpha), float(beta), n, tile_n),
        out_shape=jax.ShapeDtypeStruct((1, num_blocks * LANE), jnp.float32),
        grid_spec=pltpu.PrefetchScalarGridSpec(
            num_scalar_prefetch=0,
            grid=(num_blocks,),
            in_specs=[
                pl.BlockSpec((c, tile_n), lambda i: (0, i)),   # logits block
                pl.BlockSpec((1, tile_n), lambda i: (0, i)),   # labels block
            ],
            out_specs=pl.BlockSpec((1, LANE), lambda i: (0, i)),
        ),
        compiler_params=pltpu.CompilerParams(
            dimension_semantics=("parallel",),      # v7x: shard blocks over 2 TCs
            vmem_limit_bytes=32 * 1024 * 1024,      # ample; do not raise further
        ),
        cost_estimate=cost,
    )(pred_cm, lbl_row)

    return jnp.sum(partials) / n


def _reference(pred, labels, num_classes=10, alpha=1.0, beta=1.0):
    # Pure-JAX reference mirroring the PyTorch module.
    logp = jax.nn.log_softmax(pred, axis=1)
    onehot = jax.nn.one_hot(labels, num_classes, dtype=jnp.float32)
    nce = (-jnp.sum(onehot * logp, axis=1)) / (-jnp.sum(logp, axis=1))
    p = jnp.clip(jax.nn.softmax(pred, axis=1), EPS, 1.0)
    ohc = jnp.clip(onehot, 1e-4, 1.0)
    rce = -jnp.sum(p * jnp.log(ohc), axis=1)
    return alpha * jnp.mean(nce) + beta * jnp.mean(rce)


if __name__ == "__main__":
    NUM_CLASSES = 10
    BATCH = 8

    key = jax.random.PRNGKey(0)
    kp, kl = jax.random.split(key)
    pred = jax.random.normal(kp, (BATCH, NUM_CLASSES), dtype=jnp.float32)
    labels = jax.random.randint(kl, (BATCH,), 0, NUM_CLASSES, dtype=jnp.int32)

    ref = _reference(pred, labels, NUM_CLASSES, 1.0, 1.0)

    # Default PyTorch-style (N, C) input.
    loss = nce_and_rce_loss(pred, labels, num_classes=NUM_CLASSES,
                            alpha=1.0, beta=1.0)
    loss = jax.block_until_ready(loss)
    assert jnp.allclose(loss, ref, rtol=1e-4, atol=1e-4), (loss, ref)

    # Class-major fast path (producer emits (C, N): no relayout HBM pass).
    loss_cm = nce_and_rce_loss(pred.T, labels, num_classes=NUM_CLASSES,
                               alpha=1.0, beta=1.0, class_major=True)
    loss_cm = jax.block_until_ready(loss_cm)
    assert jnp.allclose(loss_cm, ref, rtol=1e-4, atol=1e-4), (loss_cm, ref)

    print("KERNEL_OK")
</pallas_src>

<mosaic_0001>
module attributes {stable_mosaic.version = 11 : i64} {
  func.func @kernel(%arg0: i32, %arg1: memref<10x512xf32, #tpu.memory_space<vmem>>, %arg2: memref<1x512xi32, #tpu.memory_space<vmem>>, %arg3: memref<1x128xf32, #tpu.memory_space<vmem>>) attributes {dimension_semantics = [#tpu.dimension_semantics<parallel>], iteration_bounds = array<i64: 1>, scalar_prefetch = 0 : i64, scratch_operands = 0 : i64, tpu.core_type = #tpu.core_type<tc>, window_params = [{transform_indices = @transform_0, window_bounds = array<i64: 10, 512>}, {transform_indices = @transform_1, window_bounds = array<i64: 1, 512>}, {transform_indices = @transform_2, window_bounds = array<i64: 1, 128>}]} {
    %c0 = arith.constant 0 : index
    %c0_0 = arith.constant 0 : index
    %0 = vector.load %arg1[%c0, %c0_0] : memref<10x512xf32, #tpu.memory_space<vmem>>, vector<10x512xf32>
    %c0_1 = arith.constant 0 : index
    %c0_2 = arith.constant 0 : index
    %1 = vector.load %arg2[%c0_1, %c0_2] : memref<1x512xi32, #tpu.memory_space<vmem>>, vector<1x512xi32>
    %c512_i32 = arith.constant 512 : i32
    %2 = arith.muli %arg0, %c512_i32 : i32
    %3 = tpu.iota {dimensions = array<i32: 1>} : vector<1x512xi32>
    %4 = vector.broadcast %2 : i32 to vector<1x512xi32>
    %5 = arith.addi %4, %3 : vector<1x512xi32>
    %c8_i32 = arith.constant 8 : i32
    %6 = vector.broadcast %c8_i32 : i32 to vector<1x512xi32>
    %7 = arith.cmpi slt, %5, %6 : vector<1x512xi32>
    %8 = tpu.iota {dimensions = array<i32: 0>} : vector<10x512xi32>
    %9 = vector.broadcast %1 : vector<1x512xi32> to vector<10x512xi32>
    %10 = arith.cmpi eq, %8, %9 : vector<10x512xi32>
    %cst = arith.constant 0.000000e+00 : f32
    %11 = vector.broadcast %cst : f32 to vector<10x512xf32>
    %12 = arith.select %10, %0, %11 : vector<10x512xi1>, vector<10x512xf32>
    %cst_3 = arith.constant dense<0.000000e+00> : vector<512xf32>
    %13 = vector.multi_reduction <add>, %12, %cst_3 [0] : vector<10x512xf32> to vector<512xf32>
    %14 = vector.shape_cast %13 : vector<512xf32> to vector<1x512xf32>
    %cst_4 = arith.constant dense<0xFF800000> : vector<512xf32>
    %15 = vector.multi_reduction <maximumf>, %0, %cst_4 [0] : vector<10x512xf32> to vector<512xf32>
    %16 = vector.shape_cast %15 : vector<512xf32> to vector<1x512xf32>
    %17 = vector.broadcast %16 : vector<1x512xf32> to vector<10x512xf32>
    %18 = arith.subf %0, %17 : vector<10x512xf32>
    %19 = math.exp %18 : vector<10x512xf32>
    %cst_5 = arith.constant dense<0.000000e+00> : vector<512xf32>
    %20 = vector.multi_reduction <add>, %19, %cst_5 [0] : vector<10x512xf32> to vector<512xf32>
    %21 = vector.shape_cast %20 : vector<512xf32> to vector<1x512xf32>
    %22 = math.log %21 : vector<1x512xf32>
    %23 = arith.addf %16, %22 : vector<1x512xf32>
    %cst_6 = arith.constant dense<0.000000e+00> : vector<512xf32>
    %24 = vector.multi_reduction <add>, %0, %cst_6 [0] : vector<10x512xf32> to vector<512xf32>
    %25 = vector.shape_cast %24 : vector<512xf32> to vector<1x512xf32>
    %26 = arith.subf %23, %14 : vector<1x512xf32>
    %cst_7 = arith.constant 1.000000e+01 : f32
    %27 = vector.broadcast %cst_7 : f32 to vector<1x512xf32>
    %28 = arith.mulf %27, %23 : vector<1x512xf32>
    %29 = arith.subf %28, %25 : vector<1x512xf32>
    %30 = arith.divf %26, %29 : vector<1x512xf32>
    %31 = tpu.reciprocal %21 : vector<1x512xf32> -> vector<1x512xf32>
    %32 = vector.broadcast %31 : vector<1x512xf32> to vector<10x512xf32>
    %33 = arith.mulf %19, %32 : vector<10x512xf32>
    %cst_8 = arith.constant 9.99999993E-9 : f32
    %34 = vector.broadcast %cst_8 : f32 to vector<10x512xf32>
    %35 = arith.maximumf %33, %34 : vector<10x512xf32>
    %cst_9 = arith.constant dense<0.000000e+00> : vector<512xf32>
    %36 = vector.multi_reduction <add>, %35, %cst_9 [0] : vector<10x512xf32> to vector<512xf32>
    %37 = vector.shape_cast %36 : vector<512xf32> to vector<1x512xf32>
    %38 = arith.subf %14, %23 : vector<1x512xf32>
    %39 = math.exp %38 : vector<1x512xf32>
    %cst_10 = arith.constant 9.99999993E-9 : f32
    %40 = vector.broadcast %cst_10 : f32 to vector<1x512xf32>
    %41 = arith.maximumf %39, %40 : vector<1x512xf32>
    %42 = arith.subf %37, %41 : vector<1x512xf32>
    %cst_11 = arith.constant 9.21034049 : f32
    %43 = vector.broadcast %cst_11 : f32 to vector<1x512xf32>
    %44 = arith.mulf %43, %42 : vector<1x512xf32>
    %cst_12 = arith.constant 1.000000e+00 : f32
    %45 = vector.broadcast %cst_12 : f32 to vector<1x512xf32>
    %46 = arith.mulf %45, %30 : vector<1x512xf32>
    %cst_13 = arith.constant 1.000000e+00 : f32
    %47 = vector.broadcast %cst_13 : f32 to vector<1x512xf32>
    %48 = arith.mulf %47, %44 : vector<1x512xf32>
    %49 = arith.addf %46, %48 : vector<1x512xf32>
    %cst_14 = arith.constant 0.000000e+00 : f32
    %50 = vector.broadcast %cst_14 : f32 to vector<1x512xf32>
    %51 = arith.select %7, %49, %50 : vector<1x512xi1>, vector<1x512xf32>
    %52 = vector.shape_cast %51 : vector<1x512xf32> to vector<1x1x512xf32>
    %cst_15 = arith.constant dense<0.000000e+00> : vector<1xf32>
    %53 = vector.multi_reduction <add>, %52, %cst_15 [1, 2] : vector<1x1x512xf32> to vector<1xf32>
    %54 = vector.shape_cast %53 : vector<1xf32> to vector<1x1x1xf32>
    %55 = vector.extract %54[0, 0, 0] : f32 from vector<1x1x1xf32>
    %56 = tpu.iota {dimensions = array<i32: 1>} : vector<1x128xi32>
    %c0_i32 = arith.constant 0 : i32
    %57 = vector.broadcast %c0_i32 : i32 to vector<1x128xi32>
    %58 = arith.cmpi eq, %56, %57 : vector<1x128xi32>
    %cst_16 = arith.constant 0.000000e+00 : f32
    %59 = vector.broadcast %55 : f32 to vector<1x128xf32>
    %60 = vector.broadcast %cst_16 : f32 to vector<1x128xf32>
    %61 = arith.select %58, %59, %60 : vector<1x128xi1>, vector<1x128xf32>
    %c0_17 = arith.constant 0 : index
    %c0_18 = arith.constant 0 : index
    %62 = vector.load %arg3[%c0_17, %c0_18] : memref<1x128xf32, #tpu.memory_space<vmem>>, vector<1x128xf32>
    tpu.vector_store %arg3[%c0_17, %c0_18], %61 {strides = array<i32>} : memref<1x128xf32, #tpu.memory_space<vmem>>, vector<1x128xf32>,
    return
  }
  func.func @transform_0(%arg0: i32) -> (i32, i32) {
    %c0_i32 = arith.constant 0 : i32
    %c0_i32_0 = arith.constant 0 : i32
    return %c0_i32, %arg0 : i32, i32
  }
  func.func @transform_1(%arg0: i32) -> (i32, i32) {
    %c0_i32 = arith.constant 0 : i32
    %c0_i32_0 = arith.constant 0 : i32
    return %c0_i32, %arg0 : i32, i32
  }
  func.func @transform_2(%arg0: i32) -> (i32, i32) {
    %c0_i32 = arith.constant 0 : i32
    %c0_i32_0 = arith.constant 0 : i32
    return %c0_i32, %arg0 : i32, i32
  }
}

</mosaic_0001>

<bundles_post_ra>
// kernel: nce_and_rce_loss.1
= control target key start
LH: loop header
LB: loop body
LE: loop exit
PB: predicated region body
PF: predicated region fallthrough
CT: control target
= control target key end

     0   :  { %vm108_vm0 = vcmask 1041408   ;;  %v59_v8 = vlaneseq  ;;  %vm377_vm4 = vcmask 1040384   ;;  %s454_s0 = inlined_call_operand.vmem [shape: f32[10,8], index: 0, kind: input, shape index: {}]   ;;  %s455_s1 = inlined_call_operand.vmem [shape: s32[1,8], index: 1, kind: input, shape index: {}]   ;;  %s456_s2 = inlined_call_operand.vmem [shape: f32[1,128], index: 2, kind: output, shape index: {}]  }
   0x1   :  { %v38_v0 = vld [vmem:[%s454_s0] sm:$0xff]  ;;  %v40_v1 = vld [vmem:[%s454_s0 + $0x8] sm:$0xff] }
   0x2   :  { %41 = vst [vmem:[#allocation2 + $0x20] sm:$0xff] %v40_v1  ;;  %v74_v11 = vshrl.u32 %v59_v8, 7  ;;  %v57_v16 = vld [vmem:[%s455_s1] sm:$0xf] }
   0x4   :  { %v78_v15 = vsub.s32 0, %v74_v11  ;;  %v75_v19 = vadd.s32 8, %v74_v11 }
   0x6   :  { %v79_v20 = vrot.slane %v57_v16, %v78_v15 }
   0x8   :  { %vm96_vm1 = vcmp.eq.s32.totalorder %v75_v19, %v79_v20  ;;  %vm92_vm2 = vcmp.eq.s32.totalorder %v74_v11, %v79_v20 }
   0x9   :  { %v53_v2 = vld [vmem:[#allocation2 + $0x20] sm:$0x3]  ;;  %v100_v24 = vsel %vm92_vm2, %v38_v0, 0.0 }
   0xa   :  { %v141_v3 = vsel %vm108_vm0, %v53_v2, -inf  ;;  %v104_v21 = vsel %vm96_vm1, %v53_v2, 0.0  ;;  %v241_v28 = vsel %vm108_vm0, %v53_v2, 0.0 }
   0xb   :  { %v142_v4 = vmax.f32 %v38_v0, %v141_v3  ;;  %v109_v25 = vsel %vm108_vm0, %v104_v21, 0.0  ;;  %v242_v31 = vadd.f32 %v241_v28, %v38_v0 }
   0xc   :  { %v110_v29 = vadd.f32 %v109_v25, %v100_v24 }
   0xd   :  { %v143_v5 = vrot.slane %v142_v4, 4  ;;  %v243_v35 = vrot.slane %v242_v31, 4 }
   0xe   :  { %v111_v33 = vrot.slane %v110_v29, 4 }
   0xf   :  { %v144_v6 = vmax.f32 %v142_v4, %v143_v5  ;;  %v244_v39 = vadd.f32 %v243_v35, %v242_v31 }
  0x10   :  { %v112_v37 = vadd.f32 %v111_v33, %v110_v29 }
  0x11   :  { %v145_v7 = vrot.slane %v144_v6, 2  ;;  %v245_v42 = vrot.slane %v244_v39, 2 }
  0x12   :  { %v113_v41 = vrot.slane %v112_v37, 2 }
  0x13   :  { %v146_v9 = vmax.f32 %v144_v6, %v145_v7  ;;  %v246_v44 = vadd.f32 %v245_v42, %v244_v39 }
  0x14   :  { %v114_v43 = vadd.f32 %v113_v41, %v112_v37 }
  0x15   :  { %v147_v10 = vrot.slane %v146_v9, 1  ;;  %v247_v46 = vrot.slane %v246_v44, 1 }
  0x16   :  { %v115_v45 = vrot.slane %v114_v43, 1 }
  0x17   :  { %v148_v12 = vmax.f32 %v146_v9, %v147_v10  ;;  %v248_v54 = vadd.f32 %v247_v46, %v246_v44  ;;  %v60_v10 = vand.u32 127, %v59_v8 }
  0x18   :  { %v116_v49 = vadd.f32 %v115_v45, %v114_v43 }
  0x19   :  { %v173_v13 = vsub.f32 %v38_v0, %v148_v12  ;;  %v177_v14 = vsub.f32 %v53_v2, %v148_v12  ;;  %vm69_vm3 = vcmp.lt.s32.totalorder %v60_v10, 8  ;;  %vm394_vm5 = vcmp.eq.s32.totalorder %v60_v10, 0 }
  0x1b   :  { %v181_v17 = vmul.f32 1.442695, %v173_v13  ;;  %v189_v18 = vmul.f32 1.442695, %v177_v14 }
  0x1d   :  { %408 = vpow2.f32 %v181_v17 }
  0x1e   :  { %410 = vpow2.f32 %v189_v18 }
  0x27   :  { %v409_v22 = vpop.eup %408 }
  0x28   :  { %v411_v23 = vpop.eup %410 }
  0x29   :  { %v197_v26 = vsel %vm108_vm0, %v411_v23, 0.0 }
  0x2a   :  { %v198_v27 = vadd.f32 %v409_v22, %v197_v26 }
  0x2c   :  { %v199_v30 = vrot.slane %v198_v27, 4 }
  0x2e   :  { %v200_v32 = vadd.f32 %v199_v30, %v198_v27 }
  0x30   :  { %v201_v34 = vrot.slane %v200_v32, 2 }
  0x32   :  { %v202_v36 = vadd.f32 %v201_v34, %v200_v32 }
  0x34   :  { %v203_v38 = vrot.slane %v202_v36, 1 }
  0x36   :  { %v204_v40 = vadd.f32 %v203_v38, %v202_v36 }
  0x38   :  { %412 = vlog2.f32 %v204_v40 }
  0x39   :  { %414 = vrcp.f32 %v204_v40 }
  0x42   :  { %v413_v47 = vpop.eup %412 }
  0x43   :  { %v415_v48 = vpop.eup %414  ;;  %v230_v50 = vmul.f32 0.6931472, %v413_v47 }
  0x44   :  { %v297_v51 = vmul.f32 %v415_v48, %v409_v22  ;;  %v301_v52 = vmul.f32 %v415_v48, %v411_v23 }
  0x45   :  { %v237_v53 = vadd.f32 %v230_v50, %v148_v12 }
  0x46   :  { %v305_v55 = vmax.f32 %v297_v51, 1e-08  ;;  %v309_v56 = vmax.f32 %v301_v52, 1e-08 }
  0x47   :  { %v277_v57 = vmul.f32 10.0, %v237_v53  ;;  %v345_v58 = vsub.f32 %v116_v49, %v237_v53  ;;  %v273_v5 = vsub.f32 %v237_v53, %v116_v49 }
  0x48   :  { %v313_v59 = vsel %vm108_vm0, %v309_v56, 0.0 }
  0x49   :  { %v281_v60 = vsub.f32 %v277_v57, %v248_v54  ;;  %v314_v61 = vadd.f32 %v313_v59, %v305_v55  ;;  %v349_v62 = vmul.f32 1.442695, %v345_v58 }
  0x4b   :  { %416 = vrcp.f32 %v281_v60  ;;  %v315_v63 = vrot.slane %v314_v61, 4 }
  0x4c   :  { %418 = vpow2.f32 %v349_v62 }
  0x4d   :  { %v316_v0 = vadd.f32 %v315_v63, %v314_v61 }
  0x4f   :  { %v317_v1 = vrot.slane %v316_v0, 2 }
  0x51   :  { %v318_v2 = vadd.f32 %v317_v1, %v316_v0 }
  0x53   :  { %v319_v3 = vrot.slane %v318_v2, 1 }
  0x55   :  { %v417_v4 = vpop.eup %416  ;;  %v320_v6 = vadd.f32 %v319_v3, %v318_v2 }
  0x56   :  { %v419_v7 = vpop.eup %418  ;;  %v286_v11 = vmul.f32 %v417_v4, %v273_v5 }
  0x57   :  { %v357_v9 = vmax.f32 %v419_v7, 1e-08 }
  0x59   :  { %v361_v12 = vsub.f32 %v320_v6, %v357_v9 }
  0x5b   :  { %v365_v13 = vmul.f32 9.2103405, %v361_v12 }
  0x5d   :  { %v369_v14 = vadd.f32 %v365_v13, %v286_v11 }
  0x5f   :  { %v373_v15 = vsel %vm69_vm3, %v369_v14, 0.0 }
  0x60   :  { %v378_v16 = vsel %vm377_vm4, %v373_v15, 0.0 }
  0x61   :  { %385 = vadd.xlane.f32.xlu0 %v378_v16 }
  0xee   :  { %v386_v17 = vpop.xlane.xlu0 %385 }
  0xef   :  { %v387_v18 = vrot.slane %v386_v17, 4 }
  0xf1   :  { %v388_v19 = vadd.f32 %v387_v18, %v386_v17 }
  0xf3   :  { %v389_v20 = vrot.slane %v388_v19, 2 }
  0xf5   :  { %v390_v21 = vadd.f32 %v389_v20, %v388_v19 }
  0xf7   :  { %v391_v22 = vrot.slane %v390_v21, 1 }
  0xf9   :  { %v392_v23 = vadd.f32 %v391_v22, %v390_v21 }
  0xfb   :  { %406 = vpush %v392_v23 }
 0x12c   :  { %s407_s1 = spop %406 }
 0x12d   :  { %v395_v8 = vstv %s407_s1 }
 0x12e   :  { %v396_v24 = vsel %vm394_vm5, %v395_v8, 0.0 }
 0x12f   :  { %397 = vst [vmem:[%s456_s2] sm:$0x1] %v396_v24 }

</bundles_post_ra>
